<compile_context>
chip_gen: v5e
topology: v5e:2x2
jax: 0.10.0
libtpu: 0.0.40
codegen_flags: <defaults>
</compile_context>

<pallas_src>
import jax
import jax.numpy as jnp
from jax.experimental import pallas as pl
from jax.experimental.pallas import tpu as pltpu

_SPLIT_SIZES = (2, 2, 2, 4)                     # torch.split sizes along dim=1
_GROUP = 2                                      # gcd of the split sizes
_NUM_GROUPS = sum(_SPLIT_SIZES) // _GROUP       # 5 two-channel groups
# cat order [t1, t2, t4, t3] expressed on 2-channel groups:
#   output group j reads input group _SRC_GROUPS[j]
_SRC_GROUPS = (0, 1, 3, 4, 2)


def _src_group(j):
    # Traced-scalar evaluation of _SRC_GROUPS[j], usable inside an index_map.
    #   j in {0,1} -> j ; j in {2,3} -> j+1 ; j == 4 -> 2
    return jnp.where(j < 2, j, jnp.where(j == 4, 2, j + 1))


def _copy_kernel(x_ref, o_ref):
    # Pure copy: the channel-group permutation is done entirely by the
    # BlockSpec index_maps (the pipeline DMAs reorder the groups).
    o_ref[...] = x_ref[...]


def split_cat(x, *, target_block_bytes=2 * 1024 * 1024):
    """x: (N, C, H, W) with C == sum(_SPLIT_SIZES) == 10."""
    n, c, h, w = x.shape
    assert c == sum(_SPLIT_SIZES), f"expected C={sum(_SPLIT_SIZES)}, got {c}"
    hw = h * w
    group_elems = _GROUP * hw                   # elements per 2-channel group
    itemsize = jnp.dtype(x.dtype).itemsize

    if group_elems % 128 == 0:
        # ---- dense (sublane x lane) path -------------------------------
        g_rows = group_elems // 128
        x4 = x.reshape(n, _NUM_GROUPS, g_rows, 128)     # free reshape
        group_bytes = group_elems * itemsize

        # Largest bn dividing N whose block stays <= target_block_bytes
        # (double-buffered in+out => ~4x resident; well under scoped VMEM).
        bn = 1
        for d in range(1, n + 1):
            if n % d == 0 and d * group_bytes <= target_block_bytes:
                bn = d

        block = (bn, 1, g_rows, 128)
        out4 = pl.pallas_call(
            _copy_kernel,
            out_shape=jax.ShapeDtypeStruct((n, _NUM_GROUPS, g_rows, 128),
                                           x.dtype),
            grid=(n // bn, _NUM_GROUPS),
            in_specs=[pl.BlockSpec(block,
                                   lambda i, j: (i, _src_group(j), 0, 0))],
            out_specs=pl.BlockSpec(block, lambda i, j: (i, j, 0, 0)),
            compiler_params=pltpu.CompilerParams(
                dimension_semantics=("parallel", "parallel"),
                vmem_limit_bytes=64 * 1024 * 1024,
            ),
        )(x4)
        return out4.reshape(n, c, h, w)

    # ---- fallback path: 2*H*W not a multiple of 128 --------------------
    # Block's last two dims equal the full array dims (1, group_elems), so
    # lowering is legal for any spatial size; still one DMA per 2-channel
    # group (5*N steps) with no in-kernel compute.
    # TODO(synk): for very tiny N*H*W a plain XLA slice+concat beats any
    # pallas_call due to launch/DMA-setup overhead.
    x4 = x.reshape(n, _NUM_GROUPS, 1, group_elems)
    block = (1, 1, 1, group_elems)
    out4 = pl.pallas_call(
        _copy_kernel,
        out_shape=jax.ShapeDtypeStruct(x4.shape, x.dtype),
        grid=(n, _NUM_GROUPS),
        in_specs=[pl.BlockSpec(block, lambda i, j: (i, _src_group(j), 0, 0))],
        out_specs=pl.BlockSpec(block, lambda i, j: (i, j, 0, 0)),
        compiler_params=pltpu.CompilerParams(
            dimension_semantics=("parallel", "parallel"),
        ),
    )(x4)
    return out4.reshape(n, c, h, w)


def _reference(x):
    # Plain-JAX reference of the split+cat channel permutation.
    t1 = x[:, 0:2]
    t2 = x[:, 2:4]
    t3 = x[:, 4:6]
    t4 = x[:, 6:10]
    return jnp.concatenate([t1, t2, t4, t3], axis=1)


if __name__ == "__main__":
    key = jax.random.PRNGKey(0)

    # Dense path: 2*H*W = 512 is a multiple of 128.
    x = jax.random.normal(key, (2, 10, 16, 16), dtype=jnp.float32)
    out = jax.block_until_ready(split_cat(x))
    ref = _reference(x)
    assert out.shape == ref.shape
    assert bool(jnp.array_equal(out, ref)), "dense path mismatch vs reference"

    # Fallback path: H=W=5 (the original module's spatial size), 2*H*W = 50.
    x_small = jax.random.normal(key, (2, 10, 5, 5), dtype=jnp.float32)
    out_small = jax.block_until_ready(split_cat(x_small))
    ref_small = _reference(x_small)
    assert out_small.shape == ref_small.shape
    assert bool(jnp.array_equal(out_small, ref_small)), \
        "fallback path mismatch vs reference"

    print("KERNEL_OK")
</pallas_src>

<mosaic_0001>
module attributes {stable_mosaic.version = 11 : i64} {
  func.func @_copy_kernel(%arg0: i32, %arg1: i32, %arg2: memref<2x1x4x128xf32, #tpu.memory_space<vmem>>, %arg3: memref<2x1x4x128xf32, #tpu.memory_space<vmem>>) attributes {dimension_semantics = [#tpu.dimension_semantics<parallel>, #tpu.dimension_semantics<parallel>], iteration_bounds = array<i64: 1, 5>, scalar_prefetch = 0 : i64, scratch_operands = 0 : i64, tpu.core_type = #tpu.core_type<tc>, window_params = [{transform_indices = @transform_0, window_bounds = array<i64: 2, 1, 4, 128>}, {transform_indices = @transform_1, window_bounds = array<i64: 2, 1, 4, 128>}]} {
    %c0 = arith.constant 0 : index
    %c0_0 = arith.constant 0 : index
    %c0_1 = arith.constant 0 : index
    %c0_2 = arith.constant 0 : index
    %0 = vector.load %arg2[%c0, %c0_0, %c0_1, %c0_2] : memref<2x1x4x128xf32, #tpu.memory_space<vmem>>, vector<2x1x4x128xf32>
    %c0_3 = arith.constant 0 : index
    %c0_4 = arith.constant 0 : index
    %c0_5 = arith.constant 0 : index
    %c0_6 = arith.constant 0 : index
    %1 = vector.load %arg3[%c0_3, %c0_4, %c0_5, %c0_6] : memref<2x1x4x128xf32, #tpu.memory_space<vmem>>, vector<2x1x4x128xf32>
    tpu.vector_store %arg3[%c0_3, %c0_4, %c0_5, %c0_6], %0 {strides = array<i32>} : memref<2x1x4x128xf32, #tpu.memory_space<vmem>>, vector<2x1x4x128xf32>,
    return
  }
  func.func @transform_0(%arg0: i32, %arg1: i32) -> (i32, i32, i32, i32) {
    %c2_i32 = arith.constant 2 : i32
    %0 = arith.cmpi slt, %arg1, %c2_i32 : i32
    %c4_i32 = arith.constant 4 : i32
    %1 = arith.cmpi eq, %arg1, %c4_i32 : i32
    %c1_i32 = arith.constant 1 : i32
    %2 = arith.addi %arg1, %c1_i32 : i32
    %c2_i32_0 = arith.constant 2 : i32
    %3 = arith.select %1, %c2_i32_0, %2 : i32
    %4 = arith.select %0, %arg1, %3 : i32
    %c0_i32 = arith.constant 0 : i32
    %c0_i32_1 = arith.constant 0 : i32
    %c0_i32_2 = arith.constant 0 : i32
    return %arg0, %4, %c0_i32, %c0_i32_1 : i32, i32, i32, i32
  }
  func.func @transform_1(%arg0: i32, %arg1: i32) -> (i32, i32, i32, i32) {
    %c0_i32 = arith.constant 0 : i32
    %c0_i32_0 = arith.constant 0 : i32
    %c0_i32_1 = arith.constant 0 : i32
    return %arg0, %arg1, %c0_i32, %c0_i32_0 : i32, i32, i32, i32
  }
}

</mosaic_0001>

<bundles_post_ra>
// kernel: tpu_custom_call.1
= control target key start
LH: loop header
LB: loop body
LE: loop exit
PB: predicated region body
PF: predicated region fallthrough
CT: control target
= control target key end

     0   :  { %6 = vsyncpa [#allocation3], 0  ;;  %s701_s0 = inlined_call_operand.hbm [shape: f32[2,5,4,128], index: 0, kind: input, shape index: {}]   ;;  %s702_s1 = inlined_call_operand.hbm [shape: f32[2,5,4,128], index: 1, kind: output, shape index: {}]  }
   0x1   :  { %8 = vsyncpa [#allocation3 + $0x1], 0 }
   0x2   :  { %9 = vsyncpa [#allocation4], 0 }
   0x3   :  { %11 = vsyncpa [#allocation4 + $0x1], 0  ;;  %s543_s6 = smov 0   ;;  %s545_s7 = smov 0  }
   0x4   :  { %s547_s8 = smov 0   ;;  %s549_s9 = smov 0  }
   0x5   :  { %s551_s10 = smov 0   ;;  %s553_s11 = smov 0  }
   0x6   :  { %s555_s12 = smov 0   ;;  %s557_s13 = smov 0  }
   0x7   :  { %s559_s14 = smov 0  }
   0x8 LB: > { %s284_s15 = sadd.s32 4294967295, %s525_s14   ;;  %s285_s16 = sadd.s32 4294967294, %s525_s14   ;;  %s525_s14 = sphi %s559_s14, %s17_s14   ;;  %s521_s13 = sphi %s557_s13, %s714_s13   ;;  %s517_s12 = sphi %s555_s12, %s713_s12   ;;  %s513_s11 = sphi %s553_s11, %s712_s11   ;;  %s509_s10 = sphi %s551_s10, %s711_s10   ;;  %s505_s9 = sphi %s549_s9, %s710_s9   ;;  %s501_s8 = sphi %s547_s8, %s709_s8   ;;  %s497_s7 = sphi %s545_s7, %s708_s7   ;;  %s493_s6 = sphi %s543_s6, %s707_s6  }
   0x9   : > { %s26_s17 = sadd.s32 1, %s521_s13  ;;  %p33_p0 = scmp.lt.s32.totalorder %s521_s13, 2 }
   0xa   : > { %p27_p1 = scmp.ge.s32.totalorder %s26_s17, 5  ;;  %p34_p2 = scmp.eq.s32.totalorder %s521_s13, 4 }
   0xb   : > { %s48_s18 = sadd.s32 1, %s513_s11  ;;  %p55_p3 = scmp.ne.s32.totalorder %s513_s11, %s509_s10 }
   0xc   : > { %s596_s19 = scalar_select %p27_p1, 0, %s26_s17  }
   0xd   : > { %s716_s17 = smov (%p34_p2, %s26_s17), 2  ;;  %p56_p6 = scmp.eq.s32.totalorder %s525_s14, 0 }
   0xe   : > { %p38_p4 = scmp.lt.s32.totalorder %s596_s19, 2  ;;  %p39_p5 = scmp.eq.s32.totalorder %s596_s19, 4 }
   0xf   : > { %s37_s20 = scalar_select %p33_p0, %s521_s13, %s716_s17 }
  0x10   : > { %s40_s21 = sadd.s32 1, %s596_s19  ;;  %p603_p7 = por %p56_p6, %p55_p3 }
  0x11   : > { %s718_s21 = smov (%p39_p5, %s40_s21), 2  ;;  %p61_p8 = scmp.ne.s32.totalorder %s509_s10, %s505_s9 }
  0x12   : > { %s42_s23 = scalar_select %p38_p4, %s596_s19, %s718_s21 }
  0x13   : > { %p62_p9 = scmp.eq.s32.totalorder %s284_s15, 0  ;;  %s72_s24 = ssub.s32 %s521_s13, %s596_s19 }
  0x14   : > { %s44_s25 = ssub.s32 %s37_s20, %s42_s23  ;;  %p74_p10 = scmp.eq.s32.totalorder %s72_s24, 0 }
  0x15   : > { %p46_p11 = scmp.eq.s32.totalorder %s44_s25, 0  ;;  %p614_p12 = por %p62_p9, %p61_p8 }
  0x16   : > { %s76_s27 = sadd.s32 1, %s501_s8  ;;  %p86_p13 = scmp.ne.s32.totalorder %s501_s8, %s497_s7 }
  0x17   : > { %s622_s28 = scalar_select %p46_p11, %s513_s11, %s48_s18  }
  0x18   : > { %s625_s29 = scalar_select %p74_p10, %s501_s8, %s76_s27  }
  0x19   : > { %p87_p0 = scmp.eq.s32.totalorder %s284_s15, 4  ;;  %p92_p1 = scmp.ne.s32.totalorder %s497_s7, %s493_s6 }
  0x1a   : > { %p93_p2 = scmp.eq.s32.totalorder %s285_s16, 4  ;;  %p309_p4 = scmp.lt.s32.totalorder %s525_s14, 5 }
  0x1b   : > { %p633_p3 = por %p87_p0, %p86_p13  ;;  %s113_s3 = sand.u32 1, %s513_s11  }
  0x1c   : > { %p638_p5 = por %p93_p2, %p92_p1  ;;  %s288_s4 = sshll.u32 %s113_s3, 3 }
  0x1d   : > { %s289_s5 = sshll.u32 %s37_s20, 2  ;;  %s117_s18 = scalar_lea.vmem [#allocation2], %s288_s4 }
  0x1e   : > { %s129_s15 = scalar_lea.hbm %s701_s0, %s289_s5  ;;  %s132_s16 = sshll.u32 %s117_s18, 4  ;;  %s133_s16 = int_to_ptr.vmem [resolvable:$true] %s132_s16 }
  0x1f   : > { %s130_s21 = sshll.u32 %s129_s15, 4  ;;  %p302_p6 = pnand %p309_p4, %p603_p7  ;;  %s131_s21 = int_to_ptr.hbm [resolvable:$true] %s130_s21 }
  0x20   : > { %s114_s23 = scalar_lea.sflag [#allocation3], %s113_s3  ;;  %s527_s24 = smov 320  }
  0x21   : > { %s528_s25 = smov 64   ;;  %s529_s27 = smov 4  }
  0x22   : > { %304 = dma.hbm_to_vmem [thread:$0]  (!%p302_p6), %s131_s21, 128, %s133_s16, %s114_s23, %s527_s24, %s528_s25, %s529_s27  }
  0x23   : > { %p290_p8 = scmp.ge.s32.totalorder %s525_s14, 1  ;;  %p140_p9 = scmp.lt.s32.totalorder %s525_s14, 6 }
  0x25   : > { %p141_p10 = pnand %p290_p8, %p140_p9 }
  0x26   : > { %s146_s20 = sand.u32 (!%p141_p10), 1, %s509_s10  }
  0x27   : > { %144 = sbr.rel (%p141_p10) target bundleno = 63 (0x3f), region = 24  ;;  %s291_s5 = sshll.u32 (!%p141_p10), %s146_s20, 3 }
  0x28   : > { %s147_s4 = scalar_lea.sflag (!%p141_p10), [#allocation3], %s146_s20  ;;  %s150_s9 = scalar_lea.vmem (!%p141_p10), [#allocation2], %s291_s5 }
  0x2c   : > { %484 = dma.done.wait (%p614_p12), %s147_s4, 128  }
  0x2d   : > { %486 = vsyncadd (%p614_p12), %s147_s4, 4294967168  ;;  %s167_s22 = sand.u32 1, %s497_s7   ;;  %s294_s3 = sshll.u32 %s517_s12, 2  ;;  %v177_v0 = vld [vmem:[%s150_s9] sm:$0xff]  }
  0x2e   : > { %s292_s17 = sshll.u32 %s167_s22, 3  ;;  %s195_s16 = scalar_lea.hbm %s702_s1, %s294_s3 }
  0x2f   : > { %s169_s21 = scalar_lea.vmem [#allocation5], %s292_s17  ;;  %s198_s24 = sshll.u32 %s195_s16, 4  ;;  %s199_s24 = int_to_ptr.hbm [resolvable:$true] %s198_s24 }
  0x30   : > { %s196_s23 = sshll.u32 %s169_s21, 4  ;;  %179 = vst [vmem:[%s169_s21] sm:$0xff] %v177_v0   ;;  %s182_s25 = scalar_lea.sflag [#allocation4], %s167_s22  ;;  %s197_s23 = int_to_ptr.vmem [resolvable:$true] %s196_s23 }
  0x31   : > { %s433_s26 = sshra.s32 %s199_s24, 4  ;;  %s439_s5 = scalar_lea.hbm %s702_s1, 40  ;;  %s434_s26 = int_to_ptr.hbm [resolvable:$true] %s433_s26 }
  0x32   : > { %s435_s27 = scalar_lea.hbm %s434_s26, 8  ;;  %p440_p13 = scmp.lt.s32.totalorder %s434_s26, %s702_s1 }
  0x33   : > { %p436_p7 = scmp.ne.s32.totalorder %s434_s26, %s435_s27  ;;  %p441_p0 = scmp.lt.s32.totalorder %s439_s5, %s435_s27 }
  0x35   : > { %p437_p11 = pnand %p436_p7, %p633_p3  ;;  %p442_p1 = por %p441_p0, %p440_p13 }
  0x37   : > { %p438_p12 = pneg %p437_p11 }
  0x39   : > { %p443_p2 = pnand %p442_p1, %p438_p12 }
  0x3b   : > { %446 = shalt.err (!%p443_p2)
}
  0x3c   : > { %s530_s9 = smov 64   ;;  %s531_s22 = smov 320  }
  0x3d   : > { %s532_s17 = smov 4  }
  0x3e   : > { %299 = dma.vmem_to_hbm [thread:$0]  (%p633_p3), %s197_s23, 128, %s199_s24, %s182_s25, %s530_s9, %s531_s22, %s532_s17  }
  0x3f PF: > { %p310_p4 = scmp.ge.s32.totalorder %s525_s14, 2  ;;  %s213_s15 = sand.u32 1, %s493_s6  }
  0x40   : > { %s214_s18 = scalar_lea.sflag [#allocation4], %s213_s15 }
  0x41   : > { %p306_p6 = pnand %p310_p4, %p638_p5 }
  0x43   : > { %p307_p8 = pneg %p306_p6 }
  0x45   : > { %488 = dma.done.wait (%p307_p8), %s214_s18, 128  }
  0x46   : > { %490 = vsyncadd (%p307_p8), %s214_s18, 4294967168  ;;  %s17_s14 = sadd.s32 1, %s525_s14   ;;  %s707_s6 = smov %s497_s7 }
  0x47   : > { %p14_p9 = scmp.ge.s32.totalorder %s17_s14, 7   ;;  %s708_s7 = smov %s501_s8 }
  0x48   : > { %s709_s8 = smov %s625_s29  ;;  %s710_s9 = smov %s509_s10 }
  0x49   : > { %s711_s10 = smov %s513_s11  ;;  %s712_s11 = smov %s622_s28 }
  0x4a   : > { %s713_s12 = smov %s521_s13  ;;  %s714_s13 = smov %s596_s19 }
  0x4b   :  { %16 = sbr.rel (!%p14_p9) target bundleno = 8 (0x8), region = 69 }
  0x50   :  { %220 = vsyncpa [#allocation3], 1 }
  0x51   :  { %222 = vsyncpa [#allocation3 + $0x1], 1 }
  0x52   :  { %223 = vsyncpa [#allocation4], 1 }
  0x53   :  { %225 = vsyncpa [#allocation4 + $0x1], 1 }

</bundles_post_ra>
